<compile_context>
chip_gen: v7x
topology: tpu7x:2x2x1
jax: 0.10.0
libtpu: 0.0.40
codegen_flags: <defaults>
</compile_context>

<pallas_src>
import jax
import jax.numpy as jnp
from jax import lax
from jax.experimental import pallas as pl
from jax.experimental.pallas import tpu as pltpu


def valuenet_kernel(x_ref, w1t_ref, b1_ref, w2_ref, b2_ref, o_ref):
    # fc1 on the MXU in the activation's native layout: (TB, S) @ (S, H) -> (TB, H).
    h = jnp.dot(x_ref[...], w1t_ref[...], preferred_element_type=jnp.float32)
    h = jnp.maximum(h + b1_ref[...], 0.0)                     # bias + relu, f32 (VPU)
    # fc2: contract the hidden (lane) axis of h against w2 via a dot_general whose
    # rhs contracts on its minor dim (same pattern as q @ k^T in attention). This
    # produces the (1, tile_b) lane-dense value row directly, so the store is a
    # full unmasked vst and no (TB, 1) -> (1, TB) relayout is needed. M=1 MXU work
    # is negligible; the kernel is DMA / grid-overhead bound anyway.
    v = lax.dot_general(
        w2_ref[...], h,
        dimension_numbers=(((1,), (1,)), ((), ())),
        preferred_element_type=jnp.float32,
    ) + b2_ref[...]
    o_ref[...] = v.astype(o_ref.dtype)                        # lane-dense store


def _round_up(x, m):
    return pl.cdiv(x, m) * m


def value_net_forward(x, w1, b1, w2, b2, *, block_b=8192):
    """PPO critic forward.

    x : (B, n_states)          float32 or bfloat16 (streamed as-is)
    w1: (n_hiddens, n_states)  -- PyTorch fc1.weight layout
    b1: (n_hiddens,)           -- PyTorch fc1.bias
    w2: (1, n_hiddens)         -- PyTorch fc2.weight layout
    b2: (1,)                   -- PyTorch fc2.bias
    returns (B, 1) float32
    """
    B, n_states = x.shape
    n_hiddens = w1.shape[0]

    # Weights stay fully VMEM-resident; guard against silly sizes.
    w_bytes = 4 * (n_states * n_hiddens + 2 * n_hiddens + 2)
    if w_bytes > 8 * 1024 * 1024:
        # TODO(synk): tile the hidden dimension for very wide critics.
        raise ValueError("fc1/fc2 parameters too large to keep VMEM-resident")

    # --- batch tiling ---------------------------------------------------------
    # Big tiles amortize the ~0.35 us per-grid-step overhead; balance the tiles
    # across the grid and round each to 128 lanes (unmasked output stores). Keep
    # >=2 grid steps when B > 128 so both v7x TensorCores participate. x itself
    # is never padded or copied: the ragged last tile uses Pallas' masked
    # boundary handling, and only the tiny (1, b_pad) output row is padded.
    tile_cap = max(128, min(_round_up(block_b, 128), _round_up(B, 128)))
    num_tiles = pl.cdiv(B, tile_cap)
    if num_tiles == 1 and B > 128:
        num_tiles = 2                                  # v7x: both TensorCores work
    tile_b = _round_up(pl.cdiv(B, num_tiles), 128)     # balanced, 128-aligned
    b_pad = num_tiles * tile_b

    # Tiny parameter reshapes / casts (a few hundred bytes; not an activation pass).
    w1t = w1.T.astype(x.dtype)                         # (S, H), matches x dtype
    b1_row = b1.reshape(1, n_hiddens).astype(jnp.float32)
    w2_row = w2.reshape(1, n_hiddens).astype(jnp.float32)
    b2_blk = b2.reshape(1, 1).astype(jnp.float32)

    out_pad = pl.pallas_call(
        valuenet_kernel,
        out_shape=jax.ShapeDtypeStruct((1, b_pad), jnp.float32),
        grid=(num_tiles,),
        in_specs=[
            # activation stream: one (tile_b, S) batch tile per grid step
            pl.BlockSpec((tile_b, n_states), lambda i: (i, 0)),
            # parameters: constant block index -> stay VMEM-resident
            pl.BlockSpec((n_states, n_hiddens), lambda i: (0, 0)),
            pl.BlockSpec((1, n_hiddens), lambda i: (0, 0)),
            pl.BlockSpec((1, n_hiddens), lambda i: (0, 0)),
            pl.BlockSpec((1, 1), lambda i: (0, 0)),
        ],
        out_specs=pl.BlockSpec((1, tile_b), lambda i: (0, i)),
        compiler_params=pltpu.CompilerParams(
            dimension_semantics=("parallel",),         # megacore split on v7x
            vmem_limit_bytes=48 * 1024 * 1024,         # > v5e 16 MiB default, < v7x 64 MiB
        ),
    )(x, w1t, b1_row, w2_row, b2_blk)

    # (1, B) row -> (B, 1) column (same element order).
    return out_pad[:, :B].reshape(B, 1)


def init_params(key, n_states, n_hiddens):
    """Deterministic synthetic init in PyTorch Linear layout (fan_in bound)."""
    k1, k2, k3, k4 = jax.random.split(key, 4)
    bound1 = 1.0 / jnp.sqrt(n_states)
    bound2 = 1.0 / jnp.sqrt(n_hiddens)
    w1 = jax.random.uniform(k1, (n_hiddens, n_states), jnp.float32, -bound1, bound1)
    b1 = jax.random.uniform(k2, (n_hiddens,), jnp.float32, -bound1, bound1)
    w2 = jax.random.uniform(k3, (1, n_hiddens), jnp.float32, -bound2, bound2)
    b2 = jax.random.uniform(k4, (1,), jnp.float32, -bound2, bound2)
    return w1, b1, w2, b2


def _reference(x, w1, b1, w2, b2):
    return jnp.maximum(x @ w1.T + b1, 0.0) @ w2.T + b2


if __name__ == "__main__":
    n_states, n_hiddens, batch = 4, 32, 8

    key = jax.random.PRNGKey(0)
    kx, kp = jax.random.split(key)
    x = jax.random.normal(kx, (batch, n_states), jnp.float32)
    w1, b1, w2, b2 = init_params(kp, n_states, n_hiddens)

    out = jax.block_until_ready(value_net_forward(x, w1, b1, w2, b2))
    ref = _reference(x, w1, b1, w2, b2)
    assert out.shape == (batch, 1)
    assert jnp.allclose(out, ref, atol=1e-5, rtol=1e-5)

    # Multi-tile grid + ragged (unpadded) last tile: batch 300 over 128-row tiles.
    x_big = jax.random.normal(kx, (300, n_states), jnp.float32)
    out_big = jax.block_until_ready(
        value_net_forward(x_big, w1, b1, w2, b2, block_b=128))
    ref_big = _reference(x_big, w1, b1, w2, b2)
    assert out_big.shape == (300, 1)
    assert jnp.allclose(out_big, ref_big, atol=1e-5, rtol=1e-5)

    # bf16 activation streaming (caller supplies bf16; f32 accumulation in-kernel).
    x_bf16 = x_big.astype(jnp.bfloat16)
    out_bf16 = jax.block_until_ready(
        value_net_forward(x_bf16, w1, b1, w2, b2, block_b=128))
    ref_bf16 = _reference(x_bf16.astype(jnp.float32),
                          w1.astype(jnp.bfloat16).astype(jnp.float32), b1, w2, b2)
    assert out_bf16.shape == (300, 1)
    assert jnp.allclose(out_bf16, ref_bf16, atol=1e-2, rtol=1e-2)

    print("KERNEL_OK")
</pallas_src>

<mosaic_0001>
module attributes {stable_mosaic.version = 11 : i64} {
  func.func @valuenet_kernel(%arg0: i32, %arg1: memref<128x4xf32, #tpu.memory_space<vmem>>, %arg2: memref<4x32xf32, #tpu.memory_space<vmem>>, %arg3: memref<1x32xf32, #tpu.memory_space<vmem>>, %arg4: memref<1x32xf32, #tpu.memory_space<vmem>>, %arg5: memref<1x1xf32, #tpu.memory_space<vmem>>, %arg6: memref<1x128xf32, #tpu.memory_space<vmem>>) attributes {dimension_semantics = [#tpu.dimension_semantics<parallel>], iteration_bounds = array<i64: 1>, scalar_prefetch = 0 : i64, scratch_operands = 0 : i64, tpu.core_type = #tpu.core_type<tc>, window_params = [{transform_indices = @transform_0, window_bounds = array<i64: 128, 4>}, {pipeline_mode = #tpu.pipeline_mode<synchronous>, transform_indices = @transform_1, window_bounds = array<i64: 4, 32>}, {pipeline_mode = #tpu.pipeline_mode<synchronous>, transform_indices = @transform_2, window_bounds = array<i64: 1, 32>}, {pipeline_mode = #tpu.pipeline_mode<synchronous>, transform_indices = @transform_3, window_bounds = array<i64: 1, 32>}, {pipeline_mode = #tpu.pipeline_mode<synchronous>, transform_indices = @transform_4, window_bounds = array<i64: 1, 1>}, {transform_indices = @transform_5, window_bounds = array<i64: 1, 128>}]} {
    %c0 = arith.constant 0 : index
    %c0_0 = arith.constant 0 : index
    %0 = vector.load %arg1[%c0, %c0_0] : memref<128x4xf32, #tpu.memory_space<vmem>>, vector<128x4xf32>
    %c0_1 = arith.constant 0 : index
    %c0_2 = arith.constant 0 : index
    %1 = vector.load %arg2[%c0_1, %c0_2] : memref<4x32xf32, #tpu.memory_space<vmem>>, vector<4x32xf32>
    %cst = arith.constant dense<0.000000e+00> : vector<128x32xf32>
    %2 = tpu.matmul %0, %1, %cst {dimension_numbers = #tpu.dot_dimension_numbers<[1], [0], [0], [1], [0, 0, 1, 1], [], []>} : vector<128x4xf32>, vector<4x32xf32>, vector<128x32xf32> -> vector<128x32xf32>
    %c0_3 = arith.constant 0 : index
    %c0_4 = arith.constant 0 : index
    %3 = vector.load %arg3[%c0_3, %c0_4] : memref<1x32xf32, #tpu.memory_space<vmem>>, vector<1x32xf32>
    %4 = vector.broadcast %3 : vector<1x32xf32> to vector<128x32xf32>
    %5 = arith.addf %2, %4 : vector<128x32xf32>
    %cst_5 = arith.constant 0.000000e+00 : f32
    %6 = vector.broadcast %cst_5 : f32 to vector<128x32xf32>
    %7 = arith.maximumf %5, %6 : vector<128x32xf32>
    %c0_6 = arith.constant 0 : index
    %c0_7 = arith.constant 0 : index
    %8 = vector.load %arg4[%c0_6, %c0_7] : memref<1x32xf32, #tpu.memory_space<vmem>>, vector<1x32xf32>
    %cst_8 = arith.constant dense<0.000000e+00> : vector<1x128xf32>
    %9 = tpu.matmul %8, %7, %cst_8 {dimension_numbers = #tpu.dot_dimension_numbers<[1], [1], [0], [0], [0, 0, 1, 0], [], []>} : vector<1x32xf32>, vector<128x32xf32>, vector<1x128xf32> -> vector<1x128xf32>
    %c0_9 = arith.constant 0 : index
    %c0_10 = arith.constant 0 : index
    %10 = vector.load %arg5[%c0_9, %c0_10] : memref<1x1xf32, #tpu.memory_space<vmem>>, vector<1x1xf32>
    %11 = vector.broadcast %10 : vector<1x1xf32> to vector<1x128xf32>
    %12 = arith.addf %9, %11 : vector<1x128xf32>
    %c0_11 = arith.constant 0 : index
    %c0_12 = arith.constant 0 : index
    %13 = vector.load %arg6[%c0_11, %c0_12] : memref<1x128xf32, #tpu.memory_space<vmem>>, vector<1x128xf32>
    tpu.vector_store %arg6[%c0_11, %c0_12], %12 {strides = array<i32>} : memref<1x128xf32, #tpu.memory_space<vmem>>, vector<1x128xf32>,
    return
  }
  func.func @transform_0(%arg0: i32) -> (i32, i32) {
    %c0_i32 = arith.constant 0 : i32
    %c0_i32_0 = arith.constant 0 : i32
    return %arg0, %c0_i32 : i32, i32
  }
  func.func @transform_1(%arg0: i32) -> (i32, i32) {
    %c0_i32 = arith.constant 0 : i32
    %c0_i32_0 = arith.constant 0 : i32
    %c0_i32_1 = arith.constant 0 : i32
    return %c0_i32, %c0_i32_0 : i32, i32
  }
  func.func @transform_2(%arg0: i32) -> (i32, i32) {
    %c0_i32 = arith.constant 0 : i32
    %c0_i32_0 = arith.constant 0 : i32
    %c0_i32_1 = arith.constant 0 : i32
    return %c0_i32, %c0_i32_0 : i32, i32
  }
  func.func @transform_3(%arg0: i32) -> (i32, i32) {
    %c0_i32 = arith.constant 0 : i32
    %c0_i32_0 = arith.constant 0 : i32
    %c0_i32_1 = arith.constant 0 : i32
    return %c0_i32, %c0_i32_0 : i32, i32
  }
  func.func @transform_4(%arg0: i32) -> (i32, i32) {
    %c0_i32 = arith.constant 0 : i32
    %c0_i32_0 = arith.constant 0 : i32
    %c0_i32_1 = arith.constant 0 : i32
    return %c0_i32, %c0_i32_0 : i32, i32
  }
  func.func @transform_5(%arg0: i32) -> (i32, i32) {
    %c0_i32 = arith.constant 0 : i32
    %c0_i32_0 = arith.constant 0 : i32
    return %c0_i32, %arg0 : i32, i32
  }
}

</mosaic_0001>

<bundles_post_ra>
// kernel: tpu_custom_call.1
= control target key start
LH: loop header
LB: loop body
LE: loop exit
PB: predicated region body
PF: predicated region fallthrough
CT: control target
= control target key end

     0   :  { %s755_s0 = inlined_call_operand.vmem [shape: f32[8,4], index: 0, kind: input, shape index: {}]   ;;  %s756_s1 = inlined_call_operand.vmem [shape: f32[4,32], index: 1, kind: input, shape index: {}]   ;;  %s757_s2 = inlined_call_operand.vmem [shape: f32[1,32], index: 2, kind: input, shape index: {}]   ;;  %s758_s3 = inlined_call_operand.vmem [shape: f32[1,32], index: 3, kind: input, shape index: {}]   ;;  %s759_s4 = inlined_call_operand.<no memory space> [shape: f32[1,1], index: 4, kind: input, shape index: {}]   ;;  %s760_s5 = inlined_call_operand.hbm [shape: f32[1,128], index: 5, kind: output, shape index: {}]  }
   0x1   :  { %v10_v0 = vstv %s759_s4 }
   0x2   :  { %11 = vst [vmem:[#allocation2] sm:$0x1] %v10_v0 }
   0x3   :  { %v39_v1 = vld [vmem:[%s756_s1] sm:$0xf]  ;;  %vm96_vm0 = vcmask 1043456   ;;  %vm47_vm1 = vcmask 31744   ;;  %v24_v3 = vld [vmem:[%s755_s0 + $0x8] sm:$0xff]  ;;  %v25_v4 = vld [vmem:[%s755_s0 + $0x10] sm:$0xff] }
   0x4   :  { %v23_v2 = vld [vmem:[%s755_s0] sm:$0xff]  ;;  %478 = vmatprep.subr.msk.mxu0 %vm96_vm0, %v39_v1  ;;  %v26_v5 = vld [vmem:[%s755_s0 + $0x18] sm:$0xff] }
   0x5   :  { %480 = vmatprep.mubr.msk.f32.mxu0 %vm47_vm1, %v23_v2  ;;  %479 = vmatpush3.msk.msra.mxu0 %vm96_vm0, %v39_v1  ;;  %v27_v6 = vld [vmem:[%s755_s0 + $0x20] sm:$0xff] }
   0x6   :  { %481 = vmatmul.mubr.msk.f32.vlgmr.msra.gmra.mrb[0].mxu0 %vm47_vm1, %v24_v3 }
   0x7   :  { %483 = vmatprep.mubr.msk.f32.mxu0 %vm47_vm1, %v25_v4 }
   0x8   :  { %12 = vsyncpa [#allocation4], 0  ;;  %v28_v7 = vld [vmem:[%s755_s0 + $0x28] sm:$0xff]  ;;  %v29_v8 = vld [vmem:[%s755_s0 + $0x30] sm:$0xff]  ;;  %v601_v18 = vmov 0.0|0.0   ;;  %vm602_vm2 = vmmov 0  }
   0x9   :  { %v30_v9 = vld [vmem:[%s755_s0 + $0x38] sm:$0xff]  ;;  %v31_v10 = vld [vmem:[%s755_s0 + $0x40] sm:$0xff]  ;;  %v32_v11 = vld [vmem:[%s755_s0 + $0x48] sm:$0xff]  ;;  %539 = vmatprep.subr.bf16.mxu1 %v601_v18  ;;  %v603_v19 = vmov 0.0   ;;  %v604_v21 = vmov 0   ;;  %vm272_vm3 = vcmask 261120  }
   0xa   :  { %484 = vmatmul.mubr.msk.f32.gmra.mrb[2].mxu0 %vm47_vm1, %v26_v5  ;;  %v33_v12 = vld [vmem:[%s755_s0 + $0x50] sm:$0xff]  ;;  %v34_v13 = vld [vmem:[%s755_s0 + $0x58] sm:$0xff]  ;;  %v35_v14 = vld [vmem:[%s755_s0 + $0x60] sm:$0xff]  ;;  %536 = vmatprep.mubr.msk.f32.mxu1 %vm602_vm2, %v603_v19  ;;  %s605_s27 = smov [#allocation3]  }
   0xb   :  { %486 = vmatprep.mubr.msk.f32.mxu0 %vm47_vm1, %v27_v6  ;;  %v36_v15 = vld [vmem:[%s755_s0 + $0x68] sm:$0xff]  ;;  %v37_v16 = vld [vmem:[%s755_s0 + $0x70] sm:$0xff]  ;;  %v38_v17 = vld [vmem:[%s755_s0 + $0x78] sm:$0xff]  ;;  %576 = vset.pattern.permute.xlu0 %v604_v21  ;;  %s401_s28 = sshll.u32 %s605_s27, 4  ;;  %s402_s28 = int_to_ptr.vmem [resolvable:$true] %s401_s28 }
   0xc   :  { %v262_v20 = vld [vmem:[#allocation2] sm:$0x1]  ;;  %vm712_vm4 = vmpackc.low %vm272_vm3, %vm272_vm3  ;;  %s577_s29 = scalar_lea.vmem %s402_s28, 16  ;;  %s581_s30 = scalar_lea.vmem %s402_s28, 32 }
   0xd   :  { %265 = vperm.xlu0 %576, %v262_v20   ;;  %v409_v22 = vld [vmem:[%s757_s2] ss:$0 sm:$0xff]  ;;  %p578_p0 = scmp.ne.s32.totalorder %s402_s28, %s577_s29  ;;  %p582_p1 = scmp.lt.s32.totalorder %s402_s28, %s402_s28 }
   0xe   :  { %487 = vmatmul.mubr.msk.f32.gmra.mrb[4].mxu0 %vm47_vm1, %v28_v7  ;;  %p583_p2 = scmp.lt.s32.totalorder %s581_s30, %s577_s29 }
   0xf   :  { %489 = vmatprep.mubr.msk.f32.mxu0 %vm47_vm1, %v29_v8 }
  0x10   :  { %p584_p3 = por %p583_p2, %p582_p1 }
  0x12   :  { %490 = vmatmul.mubr.msk.f32.gmra.mrb[6].mxu0 %vm47_vm1, %v30_v9  ;;  %p585_p4 = pnand %p584_p3, %p578_p0 }
  0x13   :  { %492 = vmatprep.mubr.msk.f32.mxu0 %vm47_vm1, %v31_v10 }
  0x16   :  { %493 = vmatmul.mubr.msk.f32.gmra.mrb[8].mxu0 %vm47_vm1, %v32_v11 }
  0x17   :  { %495 = vmatprep.mubr.msk.f32.mxu0 %vm47_vm1, %v33_v12 }
  0x1a   :  { %496 = vmatmul.mubr.msk.f32.gmra.mrb[10].mxu0 %vm47_vm1, %v34_v13 }
  0x1b   :  { %498 = vmatprep.mubr.msk.f32.mxu0 %vm47_vm1, %v35_v14 }
  0x1e   :  { %499 = vmatmul.mubr.msk.f32.gmra.mrb[12].mxu0 %vm47_vm1, %v36_v15 }
  0x1f   :  { %501 = vmatprep.mubr.msk.f32.mxu0 %vm47_vm1, %v37_v16  ;;  %v261_v16 = vld [vmem:[%s758_s3] sm:$0x1] }
  0x22   :  { %502 = vmatmul.mubr.msk.f32.gmra.mrb[14].mxu0 %vm47_vm1, %v38_v17  ;;  %v268_v17 = vlaneseq }
  0x24   :  { %v269_v19 = vshrl.u32 %v268_v17, 7 }
  0x26   :  { %v270_v20 = vsub.s32 0, %v269_v19 }
  0x8c   :  { %v266_v21 = vpop.permute.xlu0 %265 }
  0xd9   :  { %v482_v23 = vpop.f32.mrb[0].mxu0 }
  0xda   :  { %v172_v24 = vadd.f32 %v482_v23, %v409_v22  ;;  %v166_v25 = vpop.f32.mrb[1].mxu0 }
  0xdb   :  { %v167_v26 = vadd.f32 %v409_v22, %v166_v25 }
  0xdc   :  { %v246_v27 = vmax.f32 %v172_v24, 0.0 }
  0xdd   :  { %v245_v28 = vmax.f32 %v167_v26, 0.0  ;;  %v485_v29 = vpop.f32.mrb[2].mxu0 }
  0xde   :  { %v182_v30 = vadd.f32 %v485_v29, %v409_v22  ;;  %v176_v31 = vpop.f32.mrb[3].mxu0 }
  0xdf   :  { %v540_v33 = vpack.c.bf16 %v246_v27, %v245_v28  ;;  %v177_v34 = vadd.f32 %v409_v22, %v176_v31 }
  0xe0   :  { %v248_v35 = vmax.f32 %v182_v30, 0.0 }
  0xe1   :  { %v247_v36 = vmax.f32 %v177_v34, 0.0  ;;  %542 = vmatpush3.bf16.xpose.msk.msra.mxu1 %vm712_vm4, %v540_v33  ;;  %v488_v37 = vpop.f32.mrb[4].mxu0 }
  0xe2   :  { %v192_v38 = vadd.f32 %v488_v37, %v409_v22  ;;  %543 = vmatprep.subr.bf16.mxu1 %v601_v18  ;;  %v186_v39 = vpop.f32.mrb[5].mxu0 }
  0xe3   :  { %v544_v40 = vpack.c.bf16 %v248_v35, %v247_v36  ;;  %v187_v41 = vadd.f32 %v409_v22, %v186_v39 }
  0xe4   :  { %v250_v42 = vmax.f32 %v192_v38, 0.0 }
  0xe5   :  { %v249_v43 = vmax.f32 %v187_v41, 0.0  ;;  %v491_v44 = vpop.f32.mrb[6].mxu0 }
  0xe6   :  { %v202_v45 = vadd.f32 %v491_v44, %v409_v22  ;;  %v196_v46 = vpop.f32.mrb[7].mxu0 }
  0xe7   :  { %v548_v47 = vpack.c.bf16 %v250_v42, %v249_v43  ;;  %v197_v48 = vadd.f32 %v409_v22, %v196_v46 }
  0xe8   :  { %v252_v49 = vmax.f32 %v202_v45, 0.0 }
  0xe9   :  { %546 = vmatpush3.bf16.xpose.msk.msra.mxu1 %vm712_vm4, %v544_v40  ;;  %v251_v50 = vmax.f32 %v197_v48, 0.0  ;;  %v494_v51 = vpop.f32.mrb[8].mxu0 }
  0xea   :  { %547 = vmatprep.subr.bf16.mxu1 %v601_v18  ;;  %v212_v52 = vadd.f32 %v494_v51, %v409_v22  ;;  %v206_v53 = vpop.f32.mrb[9].mxu0 }
  0xeb   :  { %v552_v54 = vpack.c.bf16 %v252_v49, %v251_v50  ;;  %v207_v55 = vadd.f32 %v409_v22, %v206_v53 }
  0xec   :  { %v254_v56 = vmax.f32 %v212_v52, 0.0 }
  0xed   :  { %v253_v57 = vmax.f32 %v207_v55, 0.0  ;;  %v497_v58 = vpop.f32.mrb[10].mxu0 }
  0xee   :  { %v222_v59 = vadd.f32 %v497_v58, %v409_v22  ;;  %v216_v60 = vpop.f32.mrb[11].mxu0 }
  0xef   :  { %v556_v61 = vpack.c.bf16 %v254_v56, %v253_v57  ;;  %v217_v62 = vadd.f32 %v409_v22, %v216_v60 }
  0xf0   :  { %v256_v63 = vmax.f32 %v222_v59, 0.0 }
  0xf1   :  { %550 = vmatpush3.bf16.xpose.msk.msra.mxu1 %vm712_vm4, %v548_v47  ;;  %v255_v0 = vmax.f32 %v217_v62, 0.0  ;;  %v500_v1 = vpop.f32.mrb[12].mxu0 }
  0xf2   :  { %551 = vmatprep.subr.bf16.mxu1 %v601_v18  ;;  %v232_v2 = vadd.f32 %v500_v1, %v409_v22  ;;  %v226_v3 = vpop.f32.mrb[13].mxu0 }
  0xf3   :  { %v560_v4 = vpack.c.bf16 %v256_v63, %v255_v0  ;;  %v227_v5 = vadd.f32 %v409_v22, %v226_v3 }
  0xf4   :  { %v258_v6 = vmax.f32 %v232_v2, 0.0 }
  0xf5   :  { %v257_v7 = vmax.f32 %v227_v5, 0.0  ;;  %v503_v8 = vpop.f32.mrb[14].mxu0 }
  0xf6   :  { %v242_v9 = vadd.f32 %v503_v8, %v409_v22  ;;  %v236_v10 = vpop.f32.mrb[15].mxu0 }
  0xf7   :  { %v564_v11 = vpack.c.bf16 %v258_v6, %v257_v7  ;;  %v237_v12 = vadd.f32 %v409_v22, %v236_v10  ;;  %v271_v22 = vrot.slane %v266_v21, %v270_v20 }
  0xf8   :  { %v260_v13 = vmax.f32 %v242_v9, 0.0 }
  0xf9   :  { %554 = vmatpush3.bf16.xpose.msk.msra.mxu1 %vm712_vm4, %v552_v54  ;;  %v259_v14 = vmax.f32 %v237_v12, 0.0 }
  0xfa   :  { %555 = vmatprep.subr.bf16.mxu1 %v601_v18 }
  0xfb   :  { %v568_v15 = vpack.c.bf16 %v260_v13, %v259_v14 }
 0x101   :  { %558 = vmatpush3.bf16.xpose.msk.msra.mxu1 %vm712_vm4, %v556_v61 }
 0x102   :  { %559 = vmatprep.subr.bf16.mxu1 %v601_v18 }
 0x109   :  { %562 = vmatpush3.bf16.xpose.msk.msra.mxu1 %vm712_vm4, %v560_v4 }
 0x10a   :  { %563 = vmatprep.subr.bf16.mxu1 %v601_v18 }
 0x111   :  { %566 = vmatpush3.bf16.xpose.msk.msra.mxu1 %vm712_vm4, %v564_v11 }
 0x112   :  { %567 = vmatprep.subr.bf16.mxu1 %v601_v18 }
 0x119   :  { %570 = vmatpush3.bf16.xpose.msk.msra.mxu1 %vm712_vm4, %v568_v15 }
 0x120   :  { %537 = vmatmul.mubr.msk.f32.vlgmr.msra.gmra.mrb[0].mxu1 %vm272_vm3, %v261_v16 }
 0x1f3   :  { %v390_v23 = vpop.f32.mrb[0].mxu1 }
 0x1f4   :  { %v391_v24 = vadd.f32 %v390_v23, %v271_v22  ;;  %v538_v25 = vpop.f32.mrb[1].mxu1 }
 0x1f6   :  { %394 = vst [vmem:[#allocation3] sm:$0x1] %v391_v24 }
 0x1f7   :  { %588 = shalt.err (!%p585_p4)
}
 0x1f8   :  { %s589_s7 = scalar_lea.hbm %s760_s5, 16 }
 0x1f9   :  { %p590_p5 = scmp.ne.s32.totalorder %s760_s5, %s589_s7  ;;  %p593_p6 = scmp.lt.u32.totalorder %s589_s7, %s760_s5 }
 0x1fb   :  { %p595_p7 = pnand %p593_p6, %p590_p5 }
 0x1fd   :  { %598 = shalt.err (!%p595_p7)
}
 0x1fe   :  { %404 = dma.vmem_to_hbm [thread:$0]  %s402_s28, 16, %s760_s5, [#allocation4]  }
 0x1ff   :  { %599 = dma.done.wait [#allocation4], 16  }
 0x200   :  { %600 = vsyncadd [#allocation4], 4294967280 }
 0x201   :  { %408 = vsyncpa [#allocation4], 1 }

</bundles_post_ra>
